<compile_context>
chip_gen: v7x
topology: tpu7x:2x2x1
jax: 0.10.0
libtpu: 0.0.40
codegen_flags: <defaults>
</compile_context>

<pallas_src>
import jax
import jax.numpy as jnp
from jax.experimental import pallas as pl
from jax.experimental.pallas import tpu as pltpu


def _sublane_multiple(dtype):
    return {4: 8, 2: 16, 1: 32}.get(jnp.dtype(dtype).itemsize, 8)


def _vmem_budgets():
    """(per-tile budget bytes, vmem_limit_bytes), gated on chip generation."""
    try:
        info = pltpu.get_tpu_info()
        vmem_cap = getattr(info, "vmem_capacity_bytes", None)
        if vmem_cap is not None and vmem_cap >= 96 * 1024 * 1024:
            # v5e / v6e: 128 MiB physical VMEM — bigger streaming tiles sit on the
            # 85-86% HBM-roofline plateau and halve the per-step overhead count.
            return 4 * 1024 * 1024, 64 * 1024 * 1024
    except Exception:
        pass
    # v7x (64 MiB per TC) or unknown: stay conservative so double-buffering survives.
    return 2 * 1024 * 1024, 32 * 1024 * 1024


def _choose_channel_block(CH, bytes_per_chan, dtype, budget):
    """Channels per grid step: a sublane-multiple divisor of CH under the tile budget,
    preferring grids that keep v7x's two TensorCores balanced (even, >= 4 steps)."""
    sub = _sublane_multiple(dtype)
    if CH % sub != 0:
        # TODO(synk): non-sublane-multiple channel counts would need padding or an N-split
        # two-pass scheme; not expected for this model's channel counts.
        return CH
    cands = [cb for cb in range(sub, CH + 1, sub) if CH % cb == 0]
    fit = [cb for cb in cands if cb * bytes_per_chan <= budget]
    if not fit:
        # TODO(synk): if even the smallest block overflows the budget (huge N*FT), split the
        # grid over N with an accumulating two-pass scheme instead of one oversized block.
        return cands[0]

    def pick(pred):
        ok = [cb for cb in fit if pred(CH // cb)]
        return max(ok) if ok else None

    for pred in (lambda g: g >= 4 and g % 2 == 0,   # best for v7x megacore
                 lambda g: g >= 2 and g % 2 == 0,
                 lambda g: g >= 2):
        cb = pick(pred)
        if cb is not None:
            return cb
    return max(fit)


def _make_perband_kernel(N, eps):
    """x already laid out as (N, C*S, Fsub*T): plain per-channel BN over (N, lanes)."""

    def kernel(gamma_ref, beta_ref, x_ref, o_ref):
        CB = x_ref.shape[1]
        L = x_ref.shape[2]
        inv_cnt = 1.0 / float(N * L)

        i = pl.program_id(0)
        off = pl.multiple_of(i * CB, CB)
        g = gamma_ref[pl.ds(off, CB), :]            # (CB, 1) f32, fetched once per call
        b = beta_ref[pl.ds(off, CB), :]

        # Single traversal for both moments; per-N slabs avoid a full f32 copy of the tile.
        xs = jnp.zeros((CB, L), jnp.float32)
        xs2 = jnp.zeros((CB, L), jnp.float32)
        for n in range(N):                          # N is small & static
            xn = x_ref[n].astype(jnp.float32)       # (CB, L)
            xs = xs + xn
            xs2 = xs2 + xn * xn

        mean = jnp.sum(xs, axis=-1, keepdims=True) * inv_cnt
        ex2 = jnp.sum(xs2, axis=-1, keepdims=True) * inv_cnt
        var = jnp.maximum(ex2 - mean * mean, 0.0)   # guard single-pass cancellation
        inv = jax.lax.rsqrt(var + eps)
        sc = inv * g                                # (CB, 1)
        sh = b - mean * sc

        for n in range(N):
            o_ref[n] = (x_ref[n].astype(jnp.float32) * sc + sh).astype(o_ref.dtype)

    return kernel


def _make_ftwide_kernel(N, S, FsubT, eps):
    """Fallback: x laid out as (N, C, F*T); sub-band s occupies lanes [s*FsubT, (s+1)*FsubT)."""
    inv_cnt = 1.0 / float(N * FsubT)

    def kernel(gamma_ref, beta_ref, x_ref, o_ref):
        CB = x_ref.shape[1]
        FT = x_ref.shape[2]

        i = pl.program_id(0)
        off = pl.multiple_of(i * CB, CB)
        gamma = gamma_ref[pl.ds(off, CB), :]        # (CB, S) f32
        beta = beta_ref[pl.ds(off, CB), :]

        xs = jnp.zeros((CB, FT), jnp.float32)
        xs2 = jnp.zeros((CB, FT), jnp.float32)
        for n in range(N):
            xn = x_ref[n].astype(jnp.float32)
            xs = xs + xn
            xs2 = xs2 + xn * xn

        # Direct lane-range tests (no integer divide); S is small & static (typically 4).
        col = jax.lax.broadcasted_iota(jnp.int32, (CB, FT), 1)
        scale_f = jnp.zeros((CB, FT), jnp.float32)
        shift_f = jnp.zeros((CB, FT), jnp.float32)
        for s in range(S):
            in_band = (col >= s * FsubT) & (col < (s + 1) * FsubT)
            mean = jnp.sum(jnp.where(in_band, xs, 0.0), axis=-1, keepdims=True) * inv_cnt
            ex2 = jnp.sum(jnp.where(in_band, xs2, 0.0), axis=-1, keepdims=True) * inv_cnt
            var = jnp.maximum(ex2 - mean * mean, 0.0)
            inv = jax.lax.rsqrt(var + eps)
            sc = inv * gamma[:, s:s + 1]
            sh = beta[:, s:s + 1] - mean * sc
            scale_f = jnp.where(in_band, sc, scale_f)
            shift_f = jnp.where(in_band, sh, shift_f)

        for n in range(N):
            o_ref[n] = (x_ref[n].astype(jnp.float32) * scale_f + shift_f).astype(o_ref.dtype)

    return kernel


def sub_spectral_norm(x, gamma, beta, sub_bands, eps=1e-5):
    """x: (N, C, F, T); gamma/beta: (C*sub_bands,). Returns (N, C, F, T)."""
    N, C, F, T = x.shape
    S = sub_bands
    assert F % S == 0
    Fsub = F // S
    FT = F * T
    FsubT = Fsub * T
    dtype = x.dtype
    itemsize = jnp.dtype(dtype).itemsize

    budget, vmem_limit = _vmem_budgets()

    if FsubT % 128 == 0:
        # Preferred path: sub-band folded into the channel axis (free contiguous reshape,
        # identical to the PyTorch .view). Kernel has no masks/where-chains; grid is S x
        # longer; blocks stay lane-dense (FsubT is a multiple of 128).
        CH = C * S
        x3 = x.reshape(N, CH, FsubT)
        g2 = gamma.reshape(CH, 1).astype(jnp.float32)
        b2 = beta.reshape(CH, 1).astype(jnp.float32)
        CB = _choose_channel_block(CH, N * FsubT * max(itemsize, 4), dtype, budget)
        grid = (CH // CB,)
        kernel = _make_perband_kernel(N=N, eps=eps)
        in_specs = [
            pl.BlockSpec((CH, 1), lambda i: (0, 0)),          # gamma: resident, one fetch
            pl.BlockSpec((CH, 1), lambda i: (0, 0)),          # beta
            pl.BlockSpec((N, CB, FsubT), lambda i: (0, i, 0)),
        ]
        out_spec = pl.BlockSpec((N, CB, FsubT), lambda i: (0, i, 0))
        out_shape = jax.ShapeDtypeStruct((N, CH, FsubT), dtype)
    else:
        # Fallback: keep lane-dense FT-wide blocks and do the sub-band split in-kernel.
        x3 = x.reshape(N, C, FT)
        g2 = gamma.reshape(C, S).astype(jnp.float32)
        b2 = beta.reshape(C, S).astype(jnp.float32)
        CB = _choose_channel_block(C, N * FT * max(itemsize, 4), dtype, budget)
        grid = (C // CB,)
        kernel = _make_ftwide_kernel(N=N, S=S, FsubT=FsubT, eps=eps)
        in_specs = [
            pl.BlockSpec((C, S), lambda i: (0, 0)),
            pl.BlockSpec((C, S), lambda i: (0, 0)),
            pl.BlockSpec((N, CB, FT), lambda i: (0, i, 0)),
        ]
        out_spec = pl.BlockSpec((N, CB, FT), lambda i: (0, i, 0))
        out_shape = jax.ShapeDtypeStruct((N, C, FT), dtype)

    numel = N * C * FT
    cost = pl.CostEstimate(
        flops=8 * numel,
        transcendentals=C * S,
        bytes_accessed=2 * numel * itemsize + 2 * C * S * 4,
    )

    out = pl.pallas_call(
        kernel,
        out_shape=out_shape,
        grid=grid,
        in_specs=in_specs,
        out_specs=out_spec,
        compiler_params=pltpu.CompilerParams(
            dimension_semantics=("parallel",),
            vmem_limit_bytes=vmem_limit,
        ),
        cost_estimate=cost,
    )(g2, b2, x3)

    return out.reshape(N, C, F, T)


def sub_spectral_norm_ref(x, gamma, beta, sub_bands, eps=1e-5):
    """Pure-JAX reference matching PyTorch BatchNorm2d training-mode forward."""
    N, C, F, T = x.shape
    S = sub_bands
    xr = x.reshape(N, C * S, F // S, T).astype(jnp.float32)
    mean = jnp.mean(xr, axis=(0, 2, 3), keepdims=True)
    var = jnp.mean((xr - mean) ** 2, axis=(0, 2, 3), keepdims=True)
    y = (xr - mean) / jnp.sqrt(var + eps)
    y = y * gamma.reshape(1, -1, 1, 1) + beta.reshape(1, -1, 1, 1)
    return y.reshape(N, C, F, T).astype(x.dtype)


def _run_case(key, N, C, F, T, sub_bands, dtype=jnp.float32, atol=1e-4, rtol=1e-4, eps=1e-5):
    kx, kg, kb = jax.random.split(key, 3)
    x = jax.random.normal(kx, (N, C, F, T), dtype=jnp.float32).astype(dtype)
    gamma = 1.0 + 0.1 * jax.random.normal(kg, (C * sub_bands,), dtype=jnp.float32)
    beta = 0.1 * jax.random.normal(kb, (C * sub_bands,), dtype=jnp.float32)

    y = sub_spectral_norm(x, gamma, beta, sub_bands, eps)
    y = jax.block_until_ready(y)
    y_ref = sub_spectral_norm_ref(x, gamma, beta, sub_bands, eps)
    assert jnp.allclose(y.astype(jnp.float32), y_ref.astype(jnp.float32),
                        atol=atol, rtol=rtol), (
        f"mismatch vs reference for shape {(N, C, F, T)} dtype {dtype}"
    )


if __name__ == "__main__":
    key = jax.random.PRNGKey(0)
    k1, k2, k3, k4 = jax.random.split(key, 4)

    # FsubT = 64 (not a multiple of 128): FT-wide fallback path, single block.
    _run_case(k1, N=2, C=4, F=16, T=16, sub_bands=4)

    # FsubT = 192: FT-wide fallback, channel-batched multi-step grid (CB=8, grid=2).
    _run_case(k2, N=2, C=16, F=32, T=24, sub_bands=4)

    # FsubT = 128: preferred per-(channel,sub-band) path, CH=32, CB=8, grid=4.
    _run_case(k3, N=2, C=8, F=16, T=32, sub_bands=4)

    # bf16 input on the per-band path (exercises per-N slab accumulation / fused upcast).
    _run_case(k4, N=2, C=8, F=32, T=16, sub_bands=4, dtype=jnp.bfloat16,
              atol=1e-1, rtol=5e-2)

    print("KERNEL_OK")
</pallas_src>

<mosaic_0001>
module attributes {stable_mosaic.version = 11 : i64} {
  func.func @kernel(%arg0: i32, %arg1: memref<4x4xf32, #tpu.memory_space<vmem>>, %arg2: memref<4x4xf32, #tpu.memory_space<vmem>>, %arg3: memref<2x4x256xf32, #tpu.memory_space<vmem>>, %arg4: memref<2x4x256xf32, #tpu.memory_space<vmem>>) attributes {dimension_semantics = [#tpu.dimension_semantics<parallel>], iteration_bounds = array<i64: 1>, scalar_prefetch = 0 : i64, scratch_operands = 0 : i64, tpu.core_type = #tpu.core_type<tc>, window_params = [{pipeline_mode = #tpu.pipeline_mode<synchronous>, transform_indices = @transform_0, window_bounds = array<i64: 4, 4>}, {pipeline_mode = #tpu.pipeline_mode<synchronous>, transform_indices = @transform_1, window_bounds = array<i64: 4, 4>}, {transform_indices = @transform_2, window_bounds = array<i64: 2, 4, 256>}, {transform_indices = @transform_3, window_bounds = array<i64: 2, 4, 256>}]} {
    %c4_i32 = arith.constant 4 : i32
    %0 = arith.muli %arg0, %c4_i32 : i32
    %1 = tpu.assume_multiple %0, 4 : i32
    %2 = arith.index_cast %1 : i32 to index
    %c0 = arith.constant 0 : index
    %3 = vector.load %arg1[%2, %c0] : memref<4x4xf32, #tpu.memory_space<vmem>>, vector<4x4xf32>
    %4 = arith.index_cast %1 : i32 to index
    %c0_0 = arith.constant 0 : index
    %5 = vector.load %arg2[%4, %c0_0] : memref<4x4xf32, #tpu.memory_space<vmem>>, vector<4x4xf32>
    %cst = arith.constant 0.000000e+00 : f32
    %6 = vector.broadcast %cst : f32 to vector<4x256xf32>
    %cst_1 = arith.constant 0.000000e+00 : f32
    %7 = vector.broadcast %cst_1 : f32 to vector<4x256xf32>
    %c0_2 = arith.constant 0 : index
    %c0_3 = arith.constant 0 : index
    %c0_4 = arith.constant 0 : index
    %8 = vector.load %arg3[%c0_2, %c0_3, %c0_4] : memref<2x4x256xf32, #tpu.memory_space<vmem>>, vector<1x4x256xf32>
    %9 = vector.shape_cast %8 : vector<1x4x256xf32> to vector<4x256xf32>
    %10 = arith.addf %6, %9 : vector<4x256xf32>
    %11 = arith.mulf %9, %9 : vector<4x256xf32>
    %12 = arith.addf %7, %11 : vector<4x256xf32>
    %c1 = arith.constant 1 : index
    %c0_5 = arith.constant 0 : index
    %c0_6 = arith.constant 0 : index
    %13 = vector.load %arg3[%c1, %c0_5, %c0_6] : memref<2x4x256xf32, #tpu.memory_space<vmem>>, vector<1x4x256xf32>
    %14 = vector.shape_cast %13 : vector<1x4x256xf32> to vector<4x256xf32>
    %15 = arith.addf %10, %14 : vector<4x256xf32>
    %16 = arith.mulf %14, %14 : vector<4x256xf32>
    %17 = arith.addf %12, %16 : vector<4x256xf32>
    %18 = tpu.iota {dimensions = array<i32: 1>} : vector<4x256xi32>
    %cst_7 = arith.constant 0.000000e+00 : f32
    %19 = vector.broadcast %cst_7 : f32 to vector<4x256xf32>
    %cst_8 = arith.constant 0.000000e+00 : f32
    %20 = vector.broadcast %cst_8 : f32 to vector<4x256xf32>
    %c0_i32 = arith.constant 0 : i32
    %21 = vector.broadcast %c0_i32 : i32 to vector<4x256xi32>
    %22 = arith.cmpi sge, %18, %21 : vector<4x256xi32>
    %c64_i32 = arith.constant 64 : i32
    %23 = vector.broadcast %c64_i32 : i32 to vector<4x256xi32>
    %24 = arith.cmpi slt, %18, %23 : vector<4x256xi32>
    %25 = arith.andi %22, %24 : vector<4x256xi1>
    %cst_9 = arith.constant 0.000000e+00 : f32
    %26 = vector.broadcast %cst_9 : f32 to vector<4x256xf32>
    %27 = arith.select %25, %15, %26 : vector<4x256xi1>, vector<4x256xf32>
    %cst_10 = arith.constant dense<0.000000e+00> : vector<4xf32>
    %28 = vector.multi_reduction <add>, %27, %cst_10 [1] : vector<4x256xf32> to vector<4xf32>
    %29 = vector.shape_cast %28 : vector<4xf32> to vector<4x1xf32>
    %cst_11 = arith.constant 7.812500e-03 : f32
    %30 = vector.broadcast %cst_11 : f32 to vector<4x1xf32>
    %31 = arith.mulf %29, %30 : vector<4x1xf32>
    %cst_12 = arith.constant 0.000000e+00 : f32
    %32 = vector.broadcast %cst_12 : f32 to vector<4x256xf32>
    %33 = arith.select %25, %17, %32 : vector<4x256xi1>, vector<4x256xf32>
    %cst_13 = arith.constant dense<0.000000e+00> : vector<4xf32>
    %34 = vector.multi_reduction <add>, %33, %cst_13 [1] : vector<4x256xf32> to vector<4xf32>
    %35 = vector.shape_cast %34 : vector<4xf32> to vector<4x1xf32>
    %cst_14 = arith.constant 7.812500e-03 : f32
    %36 = vector.broadcast %cst_14 : f32 to vector<4x1xf32>
    %37 = arith.mulf %35, %36 : vector<4x1xf32>
    %38 = arith.mulf %31, %31 : vector<4x1xf32>
    %39 = arith.subf %37, %38 : vector<4x1xf32>
    %cst_15 = arith.constant 0.000000e+00 : f32
    %40 = vector.broadcast %cst_15 : f32 to vector<4x1xf32>
    %41 = arith.maximumf %39, %40 : vector<4x1xf32>
    %cst_16 = arith.constant 9.99999974E-6 : f32
    %42 = vector.broadcast %cst_16 : f32 to vector<4x1xf32>
    %43 = arith.addf %41, %42 : vector<4x1xf32>
    %44 = math.rsqrt %43 : vector<4x1xf32>
    %45 = vector.extract_strided_slice %3 {offsets = [0, 0], sizes = [4, 1], strides = [1, 1]} : vector<4x4xf32> to vector<4x1xf32>
    %46 = arith.mulf %44, %45 : vector<4x1xf32>
    %47 = vector.extract_strided_slice %5 {offsets = [0, 0], sizes = [4, 1], strides = [1, 1]} : vector<4x4xf32> to vector<4x1xf32>
    %48 = arith.mulf %31, %46 : vector<4x1xf32>
    %49 = arith.subf %47, %48 : vector<4x1xf32>
    %50 = vector.shape_cast %46 : vector<4x1xf32> to vector<4x1xf32>
    %51 = vector.broadcast %50 : vector<4x1xf32> to vector<4x256xf32>
    %52 = arith.select %25, %51, %19 : vector<4x256xi1>, vector<4x256xf32>
    %53 = vector.shape_cast %49 : vector<4x1xf32> to vector<4x1xf32>
    %54 = vector.broadcast %53 : vector<4x1xf32> to vector<4x256xf32>
    %55 = arith.select %25, %54, %20 : vector<4x256xi1>, vector<4x256xf32>
    %c64_i32_17 = arith.constant 64 : i32
    %56 = vector.broadcast %c64_i32_17 : i32 to vector<4x256xi32>
    %57 = arith.cmpi sge, %18, %56 : vector<4x256xi32>
    %c128_i32 = arith.constant 128 : i32
    %58 = vector.broadcast %c128_i32 : i32 to vector<4x256xi32>
    %59 = arith.cmpi slt, %18, %58 : vector<4x256xi32>
    %60 = arith.andi %57, %59 : vector<4x256xi1>
    %cst_18 = arith.constant 0.000000e+00 : f32
    %61 = vector.broadcast %cst_18 : f32 to vector<4x256xf32>
    %62 = arith.select %60, %15, %61 : vector<4x256xi1>, vector<4x256xf32>
    %cst_19 = arith.constant dense<0.000000e+00> : vector<4xf32>
    %63 = vector.multi_reduction <add>, %62, %cst_19 [1] : vector<4x256xf32> to vector<4xf32>
    %64 = vector.shape_cast %63 : vector<4xf32> to vector<4x1xf32>
    %cst_20 = arith.constant 7.812500e-03 : f32
    %65 = vector.broadcast %cst_20 : f32 to vector<4x1xf32>
    %66 = arith.mulf %64, %65 : vector<4x1xf32>
    %cst_21 = arith.constant 0.000000e+00 : f32
    %67 = vector.broadcast %cst_21 : f32 to vector<4x256xf32>
    %68 = arith.select %60, %17, %67 : vector<4x256xi1>, vector<4x256xf32>
    %cst_22 = arith.constant dense<0.000000e+00> : vector<4xf32>
    %69 = vector.multi_reduction <add>, %68, %cst_22 [1] : vector<4x256xf32> to vector<4xf32>
    %70 = vector.shape_cast %69 : vector<4xf32> to vector<4x1xf32>
    %cst_23 = arith.constant 7.812500e-03 : f32
    %71 = vector.broadcast %cst_23 : f32 to vector<4x1xf32>
    %72 = arith.mulf %70, %71 : vector<4x1xf32>
    %73 = arith.mulf %66, %66 : vector<4x1xf32>
    %74 = arith.subf %72, %73 : vector<4x1xf32>
    %cst_24 = arith.constant 0.000000e+00 : f32
    %75 = vector.broadcast %cst_24 : f32 to vector<4x1xf32>
    %76 = arith.maximumf %74, %75 : vector<4x1xf32>
    %cst_25 = arith.constant 9.99999974E-6 : f32
    %77 = vector.broadcast %cst_25 : f32 to vector<4x1xf32>
    %78 = arith.addf %76, %77 : vector<4x1xf32>
    %79 = math.rsqrt %78 : vector<4x1xf32>
    %80 = vector.extract_strided_slice %3 {offsets = [0, 1], sizes = [4, 1], strides = [1, 1]} : vector<4x4xf32> to vector<4x1xf32>
    %81 = arith.mulf %79, %80 : vector<4x1xf32>
    %82 = vector.extract_strided_slice %5 {offsets = [0, 1], sizes = [4, 1], strides = [1, 1]} : vector<4x4xf32> to vector<4x1xf32>
    %83 = arith.mulf %66, %81 : vector<4x1xf32>
    %84 = arith.subf %82, %83 : vector<4x1xf32>
    %85 = vector.shape_cast %81 : vector<4x1xf32> to vector<4x1xf32>
    %86 = vector.broadcast %85 : vector<4x1xf32> to vector<4x256xf32>
    %87 = arith.select %60, %86, %52 : vector<4x256xi1>, vector<4x256xf32>
    %88 = vector.shape_cast %84 : vector<4x1xf32> to vector<4x1xf32>
    %89 = vector.broadcast %88 : vector<4x1xf32> to vector<4x256xf32>
    %90 = arith.select %60, %89, %55 : vector<4x256xi1>, vector<4x256xf32>
    %c128_i32_26 = arith.constant 128 : i32
    %91 = vector.broadcast %c128_i32_26 : i32 to vector<4x256xi32>
    %92 = arith.cmpi sge, %18, %91 : vector<4x256xi32>
    %c192_i32 = arith.constant 192 : i32
    %93 = vector.broadcast %c192_i32 : i32 to vector<4x256xi32>
    %94 = arith.cmpi slt, %18, %93 : vector<4x256xi32>
    %95 = arith.andi %92, %94 : vector<4x256xi1>
    %cst_27 = arith.constant 0.000000e+00 : f32
    %96 = vector.broadcast %cst_27 : f32 to vector<4x256xf32>
    %97 = arith.select %95, %15, %96 : vector<4x256xi1>, vector<4x256xf32>
    %cst_28 = arith.constant dense<0.000000e+00> : vector<4xf32>
    %98 = vector.multi_reduction <add>, %97, %cst_28 [1] : vector<4x256xf32> to vector<4xf32>
    %99 = vector.shape_cast %98 : vector<4xf32> to vector<4x1xf32>
    %cst_29 = arith.constant 7.812500e-03 : f32
    %100 = vector.broadcast %cst_29 : f32 to vector<4x1xf32>
    %101 = arith.mulf %99, %100 : vector<4x1xf32>
    %cst_30 = arith.constant 0.000000e+00 : f32
    %102 = vector.broadcast %cst_30 : f32 to vector<4x256xf32>
    %103 = arith.select %95, %17, %102 : vector<4x256xi1>, vector<4x256xf32>
    %cst_31 = arith.constant dense<0.000000e+00> : vector<4xf32>
    %104 = vector.multi_reduction <add>, %103, %cst_31 [1] : vector<4x256xf32> to vector<4xf32>
    %105 = vector.shape_cast %104 : vector<4xf32> to vector<4x1xf32>
    %cst_32 = arith.constant 7.812500e-03 : f32
    %106 = vector.broadcast %cst_32 : f32 to vector<4x1xf32>
    %107 = arith.mulf %105, %106 : vector<4x1xf32>
    %108 = arith.mulf %101, %101 : vector<4x1xf32>
    %109 = arith.subf %107, %108 : vector<4x1xf32>
    %cst_33 = arith.constant 0.000000e+00 : f32
    %110 = vector.broadcast %cst_33 : f32 to vector<4x1xf32>
    %111 = arith.maximumf %109, %110 : vector<4x1xf32>
    %cst_34 = arith.constant 9.99999974E-6 : f32
    %112 = vector.broadcast %cst_34 : f32 to vector<4x1xf32>
    %113 = arith.addf %111, %112 : vector<4x1xf32>
    %114 = math.rsqrt %113 : vector<4x1xf32>
    %115 = vector.extract_strided_slice %3 {offsets = [0, 2], sizes = [4, 1], strides = [1, 1]} : vector<4x4xf32> to vector<4x1xf32>
    %116 = arith.mulf %114, %115 : vector<4x1xf32>
    %117 = vector.extract_strided_slice %5 {offsets = [0, 2], sizes = [4, 1], strides = [1, 1]} : vector<4x4xf32> to vector<4x1xf32>
    %118 = arith.mulf %101, %116 : vector<4x1xf32>
    %119 = arith.subf %117, %118 : vector<4x1xf32>
    %120 = vector.shape_cast %116 : vector<4x1xf32> to vector<4x1xf32>
    %121 = vector.broadcast %120 : vector<4x1xf32> to vector<4x256xf32>
    %122 = arith.select %95, %121, %87 : vector<4x256xi1>, vector<4x256xf32>
    %123 = vector.shape_cast %119 : vector<4x1xf32> to vector<4x1xf32>
    %124 = vector.broadcast %123 : vector<4x1xf32> to vector<4x256xf32>
    %125 = arith.select %95, %124, %90 : vector<4x256xi1>, vector<4x256xf32>
    %c192_i32_35 = arith.constant 192 : i32
    %126 = vector.broadcast %c192_i32_35 : i32 to vector<4x256xi32>
    %127 = arith.cmpi sge, %18, %126 : vector<4x256xi32>
    %c256_i32 = arith.constant 256 : i32
    %128 = vector.broadcast %c256_i32 : i32 to vector<4x256xi32>
    %129 = arith.cmpi slt, %18, %128 : vector<4x256xi32>
    %130 = arith.andi %127, %129 : vector<4x256xi1>
    %cst_36 = arith.constant 0.000000e+00 : f32
    %131 = vector.broadcast %cst_36 : f32 to vector<4x256xf32>
    %132 = arith.select %130, %15, %131 : vector<4x256xi1>, vector<4x256xf32>
    %cst_37 = arith.constant dense<0.000000e+00> : vector<4xf32>
    %133 = vector.multi_reduction <add>, %132, %cst_37 [1] : vector<4x256xf32> to vector<4xf32>
    %134 = vector.shape_cast %133 : vector<4xf32> to vector<4x1xf32>
    %cst_38 = arith.constant 7.812500e-03 : f32
    %135 = vector.broadcast %cst_38 : f32 to vector<4x1xf32>
    %136 = arith.mulf %134, %135 : vector<4x1xf32>
    %cst_39 = arith.constant 0.000000e+00 : f32
    %137 = vector.broadcast %cst_39 : f32 to vector<4x256xf32>
    %138 = arith.select %130, %17, %137 : vector<4x256xi1>, vector<4x256xf32>
    %cst_40 = arith.constant dense<0.000000e+00> : vector<4xf32>
    %139 = vector.multi_reduction <add>, %138, %cst_40 [1] : vector<4x256xf32> to vector<4xf32>
    %140 = vector.shape_cast %139 : vector<4xf32> to vector<4x1xf32>
    %cst_41 = arith.constant 7.812500e-03 : f32
    %141 = vector.broadcast %cst_41 : f32 to vector<4x1xf32>
    %142 = arith.mulf %140, %141 : vector<4x1xf32>
    %143 = arith.mulf %136, %136 : vector<4x1xf32>
    %144 = arith.subf %142, %143 : vector<4x1xf32>
    %cst_42 = arith.constant 0.000000e+00 : f32
    %145 = vector.broadcast %cst_42 : f32 to vector<4x1xf32>
    %146 = arith.maximumf %144, %145 : vector<4x1xf32>
    %cst_43 = arith.constant 9.99999974E-6 : f32
    %147 = vector.broadcast %cst_43 : f32 to vector<4x1xf32>
    %148 = arith.addf %146, %147 : vector<4x1xf32>
    %149 = math.rsqrt %148 : vector<4x1xf32>
    %150 = vector.extract_strided_slice %3 {offsets = [0, 3], sizes = [4, 1], strides = [1, 1]} : vector<4x4xf32> to vector<4x1xf32>
    %151 = arith.mulf %149, %150 : vector<4x1xf32>
    %152 = vector.extract_strided_slice %5 {offsets = [0, 3], sizes = [4, 1], strides = [1, 1]} : vector<4x4xf32> to vector<4x1xf32>
    %153 = arith.mulf %136, %151 : vector<4x1xf32>
    %154 = arith.subf %152, %153 : vector<4x1xf32>
    %155 = vector.shape_cast %151 : vector<4x1xf32> to vector<4x1xf32>
    %156 = vector.broadcast %155 : vector<4x1xf32> to vector<4x256xf32>
    %157 = arith.select %130, %156, %122 : vector<4x256xi1>, vector<4x256xf32>
    %158 = vector.shape_cast %154 : vector<4x1xf32> to vector<4x1xf32>
    %159 = vector.broadcast %158 : vector<4x1xf32> to vector<4x256xf32>
    %160 = arith.select %130, %159, %125 : vector<4x256xi1>, vector<4x256xf32>
    %c0_44 = arith.constant 0 : index
    %c0_45 = arith.constant 0 : index
    %c0_46 = arith.constant 0 : index
    %161 = vector.load %arg3[%c0_44, %c0_45, %c0_46] : memref<2x4x256xf32, #tpu.memory_space<vmem>>, vector<1x4x256xf32>
    %162 = vector.shape_cast %161 : vector<1x4x256xf32> to vector<4x256xf32>
    %163 = arith.mulf %162, %157 : vector<4x256xf32>
    %164 = arith.addf %163, %160 : vector<4x256xf32>
    %c0_47 = arith.constant 0 : index
    %c0_48 = arith.constant 0 : index
    %c0_49 = arith.constant 0 : index
    %165 = vector.load %arg4[%c0_47, %c0_48, %c0_49] : memref<2x4x256xf32, #tpu.memory_space<vmem>>, vector<1x4x256xf32>
    %166 = vector.shape_cast %165 : vector<1x4x256xf32> to vector<4x256xf32>
    %167 = vector.shape_cast %164 : vector<4x256xf32> to vector<1x4x256xf32>
    tpu.vector_store %arg4[%c0_47, %c0_48, %c0_49], %167 {strides = array<i32>} : memref<2x4x256xf32, #tpu.memory_space<vmem>>, vector<1x4x256xf32>,
    %c1_50 = arith.constant 1 : index
    %c0_51 = arith.constant 0 : index
    %c0_52 = arith.constant 0 : index
    %168 = vector.load %arg3[%c1_50, %c0_51, %c0_52] : memref<2x4x256xf32, #tpu.memory_space<vmem>>, vector<1x4x256xf32>
    %169 = vector.shape_cast %168 : vector<1x4x256xf32> to vector<4x256xf32>
    %170 = arith.mulf %169, %157 : vector<4x256xf32>
    %171 = arith.addf %170, %160 : vector<4x256xf32>
    %c1_53 = arith.constant 1 : index
    %c0_54 = arith.constant 0 : index
    %c0_55 = arith.constant 0 : index
    %172 = vector.load %arg4[%c1_53, %c0_54, %c0_55] : memref<2x4x256xf32, #tpu.memory_space<vmem>>, vector<1x4x256xf32>
    %173 = vector.shape_cast %172 : vector<1x4x256xf32> to vector<4x256xf32>
    %174 = vector.shape_cast %171 : vector<4x256xf32> to vector<1x4x256xf32>
    tpu.vector_store %arg4[%c1_53, %c0_54, %c0_55], %174 {strides = array<i32>} : memref<2x4x256xf32, #tpu.memory_space<vmem>>, vector<1x4x256xf32>,
    return
  }
  func.func @transform_0(%arg0: i32) -> (i32, i32) {
    %c0_i32 = arith.constant 0 : i32
    %c0_i32_0 = arith.constant 0 : i32
    %c0_i32_1 = arith.constant 0 : i32
    return %c0_i32, %c0_i32_0 : i32, i32
  }
  func.func @transform_1(%arg0: i32) -> (i32, i32) {
    %c0_i32 = arith.constant 0 : i32
    %c0_i32_0 = arith.constant 0 : i32
    %c0_i32_1 = arith.constant 0 : i32
    return %c0_i32, %c0_i32_0 : i32, i32
  }
  func.func @transform_2(%arg0: i32) -> (i32, i32, i32) {
    %c0_i32 = arith.constant 0 : i32
    %c0_i32_0 = arith.constant 0 : i32
    %c0_i32_1 = arith.constant 0 : i32
    return %c0_i32, %arg0, %c0_i32_0 : i32, i32, i32
  }
  func.func @transform_3(%arg0: i32) -> (i32, i32, i32) {
    %c0_i32 = arith.constant 0 : i32
    %c0_i32_0 = arith.constant 0 : i32
    %c0_i32_1 = arith.constant 0 : i32
    return %c0_i32, %arg0, %c0_i32_0 : i32, i32, i32
  }
}

</mosaic_0001>

<bundles_post_ra>
// kernel: tpu_custom_call.1
= control target key start
LH: loop header
LB: loop body
LE: loop exit
PB: predicated region body
PF: predicated region fallthrough
CT: control target
= control target key end

     0   :  { %8 = vsyncpa [#allocation3], 0  ;;  %s554_s0 = inlined_call_operand.hbm [shape: f32[4,4], index: 0, kind: input, shape index: {}]   ;;  %s555_s1 = inlined_call_operand.hbm [shape: f32[4,4], index: 1, kind: input, shape index: {}]   ;;  %s556_s2 = inlined_call_operand.hbm [shape: f32[2,4,256], index: 2, kind: input, shape index: {}]   ;;  %s557_s3 = inlined_call_operand.hbm [shape: f32[2,4,256], index: 3, kind: output, shape index: {}]  }
   0x1   :  { %9 = vsyncpa [#allocation6], 0 }
   0x2   :  { %10 = vsyncpa [#allocation4], 0  ;;  %s407_s12 = smov [#allocation5]   ;;  %s408_s14 = smov [#allocation2]  }
   0x3   :  { %s27_s13 = sshll.u32 %s407_s12, 4  ;;  %s17_s15 = sshll.u32 %s408_s14, 4  ;;  %s28_s13 = int_to_ptr.vmem [resolvable:$true] %s27_s13  ;;  %s18_s15 = int_to_ptr.vmem [resolvable:$true] %s17_s15 }
   0x4   :  { %s313_s18 = scalar_lea.hbm %s555_s1, 64 }
   0x5   :  { %p314_p0 = scmp.ne.s32.totalorder %s555_s1, %s313_s18  ;;  %p317_p1 = scmp.lt.u32.totalorder %s313_s18, %s555_s1 }
   0x7   :  { %p319_p2 = pnand %p317_p1, %p314_p0 }
   0x9   :  { %322 = shalt.err (!%p319_p2)
}
   0xa   :  { %s323_s23 = scalar_lea.vmem %s28_s13, 64  ;;  %p328_p4 = scmp.lt.s32.totalorder %s28_s13, %s28_s13 }
   0xb   :  { %p324_p3 = scmp.ne.s32.totalorder %s28_s13, %s323_s23  ;;  %p329_p5 = scmp.lt.s32.totalorder %s323_s23, %s323_s23 }
   0xd   :  { %p330_p6 = por %p329_p5, %p328_p4 }
   0xf   :  { %p331_p7 = pnand %p330_p6, %p324_p3 }
  0x11   :  { %334 = shalt.err (!%p331_p7)
}
  0x12   :  { %30 = dma.hbm_to_vmem [thread:$0]  %s555_s1, 64, %s28_s13, [#allocation6]  }
  0x13   :  { %s335_s28 = scalar_lea.hbm %s554_s0, 64 }
  0x14   :  { %p336_p8 = scmp.ne.s32.totalorder %s554_s0, %s335_s28  ;;  %p339_p9 = scmp.lt.u32.totalorder %s335_s28, %s554_s0 }
  0x16   :  { %p341_p10 = pnand %p339_p9, %p336_p8 }
  0x18   :  { %344 = shalt.err (!%p341_p10)
}
  0x19   :  { %s345_s6 = scalar_lea.vmem %s18_s15, 64  ;;  %p350_p12 = scmp.lt.s32.totalorder %s18_s15, %s18_s15 }
  0x1a   :  { %p346_p11 = scmp.ne.s32.totalorder %s18_s15, %s345_s6  ;;  %p351_p13 = scmp.lt.s32.totalorder %s345_s6, %s345_s6 }
  0x1c   :  { %p352_p0 = por %p351_p13, %p350_p12 }
  0x1e   :  { %p353_p1 = pnand %p352_p0, %p346_p11 }
  0x20   :  { %356 = shalt.err (!%p353_p1)
}
  0x21   :  { %20 = dma.hbm_to_vmem [thread:$0]  %s554_s0, 64, %s18_s15, [#allocation3]  }
  0x22   :  { %s409_s8 = smov [#allocation7]   ;;  %s357_s12 = scalar_lea.hbm %s556_s2, 256 }
  0x23   :  { %s36_s9 = sshll.u32 %s409_s8, 4  ;;  %p358_p2 = scmp.ne.s32.totalorder %s556_s2, %s357_s12  ;;  %s37_s9 = int_to_ptr.vmem [resolvable:$true] %s36_s9 }
  0x24   :  { %p361_p3 = scmp.lt.u32.totalorder %s357_s12, %s556_s2 }
  0x26   :  { %p363_p4 = pnand %p361_p3, %p358_p2 }
  0x28   :  { %366 = shalt.err (!%p363_p4)
}
  0x29   :  { %s367_s18 = scalar_lea.vmem %s37_s9, 256  ;;  %p372_p6 = scmp.lt.s32.totalorder %s37_s9, %s37_s9 }
  0x2a   :  { %p368_p5 = scmp.ne.s32.totalorder %s37_s9, %s367_s18  ;;  %p373_p7 = scmp.lt.s32.totalorder %s367_s18, %s367_s18 }
  0x2c   :  { %p374_p8 = por %p373_p7, %p372_p6 }
  0x2e   :  { %p375_p9 = pnand %p374_p8, %p368_p5 }
  0x30   :  { %378 = shalt.err (!%p375_p9)
}
  0x31   :  { %s410_s0 = smov 128   ;;  %s411_s15 = smov 8  }
  0x32   :  { %42 = dma.hbm_to_vmem [thread:$0]  %s556_s2, 256, %s37_s9, [#allocation6], %s410_s0, %s410_s0, %s411_s15  }
  0x33   :  { %401 = dma.done.wait [#allocation3], 64  }
  0x34   :  { %402 = vsyncadd [#allocation3], 4294967232 }
  0x35   :  { %403 = dma.done.wait [#allocation6], 320  }
  0x36   :  { %404 = vsyncadd [#allocation6], 4294966976  ;;  %v66_v0 = vlaneseq  ;;  %v481_v3 = vld [vmem:[#allocation7] sm:$0xff]  ;;  %v483_v4 = vld [vmem:[#allocation7 + $0x8] sm:$0xff]  ;;  %vm80_vm2 = vcmask 1043456   ;;  %v412_v27 = vmov 0  }
  0x37   :  { %v63_v5 = vadd.f32 %v483_v4, %v481_v3  ;;  %v64_v6 = vmul.f32 %v483_v4, %v483_v4  ;;  %v59_v7 = vmul.f32 %v481_v3, %v481_v3  ;;  %296 = vset.pattern.permute.xlu0 %v412_v27  ;;  %v413_v28 = vmov 1   ;;  %v54_v61 = vld [vmem:[#allocation2] sm:$0xf]  ;;  %s416_s2 = smov [#allocation8]  }
  0x38   :  { %v476_v1 = vand.u32 127, %v66_v0  ;;  %297 = vset.pattern.permute.xlu1 %v413_v28  ;;  %s273_s21 = sshll.u32 %s416_s2, 4  ;;  %s274_s21 = int_to_ptr.vmem [resolvable:$true] %s273_s21 }
  0x39   :  { %v76_v10 = vcombine.high %v63_v5, %v63_v5  ;;  %v65_v11 = vadd.f32 %v64_v6, %v59_v7  ;;  %v414_v7 = vmov 3   ;;  %s379_s22 = scalar_lea.vmem %s274_s21, 256  ;;  %p384_p11 = scmp.lt.s32.totalorder %s274_s21, %s274_s21 }
  0x3a   :  { %v479_v2 = vadd.s32 128, %v476_v1  ;;  %vm120_vm0 = vcmp.ge.s32.totalorder %v476_v1, 64  ;;  %vm71_vm1 = vcmp.lt.s32.totalorder %v476_v1, 64  ;;  %p380_p10 = scmp.ne.s32.totalorder %s274_s21, %s379_s22  ;;  %p385_p12 = scmp.lt.s32.totalorder %s379_s22, %s379_s22 }
  0x3b   :  { %v126_v8 = vsel %vm120_vm0, %v63_v5, 0.0  ;;  %v78_v9 = vsel %vm71_vm1, %v63_v5, 0.0  ;;  %v88_v16 = vcombine.high %v65_v11, %v65_v11  ;;  %v90_v19 = vsel %vm71_vm1, %v65_v11, 0.0 }
  0x3c   :  { %vm209_vm3 = vcmp.ge.s32.totalorder %v479_v2, 192  ;;  %vm167_vm4 = vcmp.lt.s32.totalorder %v479_v2, 192  ;;  %v128_v12 = vsel %vm80_vm2, %v126_v8, 0.0  ;;  %v81_v13 = vsel %vm80_vm2, %v78_v9, 0.0  ;;  %p386_p13 = por %p385_p12, %p384_p11 }
  0x3d   :  { %131 = vadd.xlane.f32.xlu1 %v128_v12  ;;  %84 = vadd.xlane.f32.xlu0 %v81_v13  ;;  %v215_v14 = vsel %vm209_vm3, %v76_v10, 0.0  ;;  %v171_v15 = vsel %vm167_vm4, %v76_v10, 0.0  ;;  %v179_v20 = vsel %vm167_vm4, %v88_v16, 0.0  ;;  %v92_v21 = vsel %vm80_vm2, %v90_v19, 0.0  ;;  %v56_v13 = vld [vmem:[#allocation5] sm:$0xf] }
  0x3e   :  { %v217_v17 = vsel %vm80_vm2, %v215_v14, 0.0  ;;  %v173_v18 = vsel %vm80_vm2, %v171_v15, 0.0  ;;  %v181_v22 = vsel %vm80_vm2, %v179_v20, 0.0  ;;  %v134_v23 = vsel %vm120_vm0, %v65_v11, 0.0  ;;  %p387_p0 = pnand %p386_p13, %p380_p10 }
  0x3f   :  { %v223_v24 = vsel %vm209_vm3, %v88_v16, 0.0  ;;  %v136_v25 = vsel %vm80_vm2, %v134_v23, 0.0  ;;  %v415_v9 = vmov 2  }
  0x40   :  { %v225_v26 = vsel %vm80_vm2, %v223_v24, 0.0 }
  0x41   :  { %219 = vadd.xlane.f32.xlu1 %v217_v17  ;;  %175 = vadd.xlane.f32.xlu0 %v173_v18 }
  0x45   :  { %95 = vadd.xlane.f32.xlu0 %v92_v21  ;;  %183 = vadd.xlane.f32.xlu1 %v181_v22 }
  0x49   :  { %139 = vadd.xlane.f32.xlu0 %v136_v25  ;;  %227 = vadd.xlane.f32.xlu1 %v225_v26 }
  0xca   :  { %v132_v29 = vpop.xlane.xlu1 %131  ;;  %v85_v30 = vpop.xlane.xlu0 %84 }
  0xcb   :  { %v86_v33 = vmul.f32 0.0078125, %v85_v30  ;;  %v133_v35 = vmul.f32 0.0078125, %v132_v29 }
  0xcd   :  { %v98_v38 = vmul.f32 %v86_v33, %v86_v33  ;;  %v142_v43 = vmul.f32 %v133_v35, %v133_v35 }
  0xce   :  { %v220_v31 = vpop.xlane.xlu1 %219  ;;  %v176_v32 = vpop.xlane.xlu0 %175 }
  0xcf   :  { %v177_v34 = vmul.f32 0.0078125, %v176_v32  ;;  %v221_v39 = vmul.f32 0.0078125, %v220_v31 }
  0xd1   :  { %v186_v42 = vmul.f32 %v177_v34, %v177_v34  ;;  %v230_v48 = vmul.f32 %v221_v39, %v221_v39 }
  0xd2   :  { %v96_v36 = vpop.xlane.xlu0 %95  ;;  %v184_v37 = vpop.xlane.xlu1 %183 }
  0xd3   :  { %v97_v40 = vmul.f32 0.0078125, %v96_v36  ;;  %v185_v41 = vmul.f32 0.0078125, %v184_v37 }
  0xd5   :  { %v99_v44 = vsub.f32 %v97_v40, %v98_v38  ;;  %v187_v45 = vsub.f32 %v185_v41, %v186_v42 }
  0xd6   :  { %v140_v46 = vpop.xlane.xlu0 %139  ;;  %v228_v47 = vpop.xlane.xlu1 %227 }
  0xd7   :  { %v100_v49 = vmax.f32 %v99_v44, 0.0  ;;  %v141_v50 = vmul.f32 0.0078125, %v140_v46  ;;  %v229_v51 = vmul.f32 0.0078125, %v228_v47  ;;  %v188_v54 = vmax.f32 %v187_v45, 0.0 }
  0xd9   :  { %v101_v52 = vadd.f32 1e-05, %v100_v49  ;;  %v143_v53 = vsub.f32 %v141_v50, %v142_v43  ;;  %v231_v56 = vsub.f32 %v229_v51, %v230_v48  ;;  %v189_v58 = vadd.f32 1e-05, %v188_v54 }
  0xdb   :  { %305 = vrsqrt.f32 %v101_v52  ;;  %v144_v55 = vmax.f32 %v143_v53, 0.0  ;;  %v232_v59 = vmax.f32 %v231_v56, 0.0 }
  0xdd   :  { %v145_v57 = vadd.f32 1e-05, %v144_v55  ;;  %v233_v60 = vadd.f32 1e-05, %v232_v59 }
  0xdf   :  { %307 = vrsqrt.f32 %v145_v57 }
  0xe0   :  { %309 = vrsqrt.f32 %v189_v58 }
  0xe1   :  { %311 = vrsqrt.f32 %v233_v60 }
  0xe5   :  { %v306_v62 = vpop.eup %305 }
  0xe6   :  { %v103_v63 = vmul.f32 %v306_v62, %v54_v61 }
  0xe8   :  { %108 = vperm.xlu0 %296, %v103_v63   ;;  %v104_v12 = vmul.f32 %v103_v63, %v86_v33 }
  0xe9   :  { %v308_v0 = vpop.eup %307 }
  0xea   :  { %v147_v5 = vmul.f32 %v308_v0, %v54_v61  ;;  %v310_v6 = vpop.eup %309  ;;  %v105_v14 = vsub.f32 %v56_v13, %v104_v12 }
  0xeb   :  { %v191_v8 = vmul.f32 %v310_v6, %v54_v61  ;;  %v312_v10 = vpop.eup %311 }
  0xec   :  { %152 = vperm.xlu1 %297, %v147_v5   ;;  %304 = vset.pattern.permute.xlu0 %v414_v7  ;;  %v235_v11 = vmul.f32 %v312_v10, %v54_v61  ;;  %v148_v15 = vmul.f32 %v147_v5, %v133_v35 }
  0xed   :  { %v192_v17 = vmul.f32 %v191_v8, %v177_v34 }
  0xee   :  { %v149_v16 = vsub.f32 %v56_v13, %v148_v15  ;;  %v236_v19 = vmul.f32 %v235_v11, %v221_v39 }
  0xef   :  { %v193_v18 = vsub.f32 %v56_v13, %v192_v17 }
  0xf0   :  { %298 = vset.pattern.permute.xlu1 %v415_v9  ;;  %v237_v20 = vsub.f32 %v56_v13, %v236_v19 }
  0xf1   :  { %196 = vperm.xlu1 %298, %v191_v8  }
  0xf5   :  { %299 = vset.pattern.permute.xlu1 %v414_v7 }
  0xf6   :  { %240 = vperm.xlu1 %299, %v235_v11  }
  0xfa   :  { %300 = vset.pattern.permute.xlu1 %v412_v27 }
  0xfb   :  { %115 = vperm.xlu1 %300, %v105_v14  }
  0xff   :  { %301 = vset.pattern.permute.xlu1 %v413_v28 }
 0x100   :  { %159 = vperm.xlu1 %301, %v149_v16  }
 0x104   :  { %302 = vset.pattern.permute.xlu1 %v415_v9 }
 0x105   :  { %203 = vperm.xlu1 %302, %v193_v18  }
 0x109   :  { %303 = vset.pattern.permute.xlu1 %v414_v7 }
 0x10a   :  { %247 = vperm.xlu1 %303, %v237_v20  }
 0x167   :  { %v109_v26 = vpop.permute.xlu0 %108 }
 0x168   :  { %v111_v30 = vsel %vm71_vm1, %v109_v26, 0.0 }
 0x16b   :  { %v153_v21 = vpop.permute.xlu1 %152 }
 0x16c   :  { %v155_v31 = vsel %vm120_vm0, %v153_v21, %v111_v30 }
 0x170   :  { %v197_v22 = vpop.permute.xlu1 %196 }
 0x171   :  { %v200_v27 = vsel %vm167_vm4, %v197_v22, 0.0 }
 0x175   :  { %v241_v23 = vpop.permute.xlu1 %240 }
 0x176   :  { %v244_v28 = vsel %vm209_vm3, %v241_v23, %v200_v27 }
 0x177   :  { %v254_v32 = vcombine.low %v155_v31, %v244_v28 }
 0x179   :  { %v256_v38 = vmul.f32 %v254_v32, %v481_v3  ;;  %v264_v39 = vmul.f32 %v254_v32, %v483_v4 }
 0x17a   :  { %v116_v24 = vpop.permute.xlu1 %115 }
 0x17b   :  { %v118_v33 = vsel %vm71_vm1, %v116_v24, 0.0 }
 0x17f   :  { %v160_v25 = vpop.permute.xlu1 %159 }
 0x180   :  { %v162_v36 = vsel %vm120_vm0, %v160_v25, %v118_v33 }
 0x184   :  { %v204_v29 = vpop.permute.xlu1 %203 }
 0x185   :  { %v207_v34 = vsel %vm167_vm4, %v204_v29, 0.0 }
 0x189   :  { %v248_v35 = vpop.permute.xlu1 %247 }
 0x18a   :  { %v251_v37 = vsel %vm209_vm3, %v248_v35, %v207_v34 }
 0x18b   :  { %v259_v40 = vcombine.low %v162_v36, %v251_v37 }
 0x18d   :  { %v261_v41 = vadd.f32 %v259_v40, %v256_v38  ;;  %v265_v42 = vadd.f32 %v264_v39, %v259_v40 }
 0x18f   :  { %262 = vst [vmem:[#allocation8] sm:$0xff] %v261_v41  ;;  %267 = vst [vmem:[#allocation8 + $0x8] sm:$0xff] %v265_v42 }
 0x190   :  { %390 = shalt.err (!%p387_p0)
}
 0x191   :  { %s391_s25 = scalar_lea.hbm %s557_s3, 256 }
 0x192   :  { %p392_p1 = scmp.ne.s32.totalorder %s557_s3, %s391_s25  ;;  %p395_p2 = scmp.lt.u32.totalorder %s391_s25, %s557_s3 }
 0x194   :  { %p397_p3 = pnand %p395_p2, %p392_p1 }
 0x196   :  { %400 = shalt.err (!%p397_p3)
}
 0x197   :  { %279 = dma.vmem_to_hbm [thread:$0]  %s274_s21, 256, %s557_s3, [#allocation4], %s410_s0, %s410_s0, %s411_s15  }
 0x198   :  { %405 = dma.done.wait [#allocation4], 256  }
 0x199   :  { %406 = vsyncadd [#allocation4], 4294967040 }
 0x19a   :  { %283 = vsyncpa [#allocation3], 1 }
 0x19b   :  { %284 = vsyncpa [#allocation6], 1 }
 0x19c   :  { %285 = vsyncpa [#allocation4], 1 }

</bundles_post_ra>
